<compile_context>
chip_gen: v7x
topology: tpu7x:2x2x1
jax: 0.10.0
libtpu: 0.0.40
codegen_flags: <defaults>
</compile_context>

<pallas_src>
import functools

import jax
import jax.numpy as jnp
from jax.experimental import pallas as pl
from jax.experimental.pallas import tpu as pltpu


def _mlp_fused_kernel(*refs, out_dims: tuple):
    """Fused MLP.

    refs = (x, w_0, ..., w_{L-1}, b_packed, out)
      x:        (B, F_in)          bf16, VMEM
      w_i:      (F_in_i, F_out_i)  bf16, VMEM
      b_packed: (L, 128)           f32,  VMEM (row i holds bias_i, zero-padded)
      out:      (B, F_out_last)    f32,  VMEM
    Activations stay in-register/VMEM between layers (never touch HBM).
    ReLU on all but the last layer; accumulation in f32.
    """
    num_layers = len(out_dims)
    x_ref = refs[0]
    w_refs = refs[1:1 + num_layers]
    b_ref = refs[1 + num_layers]
    o_ref = refs[-1]

    b_all = b_ref[...]          # (L, 128) f32, loaded exactly once
    h = x_ref[...]              # bf16, fed straight to the MXU
    for i in range(num_layers):
        w = w_refs[i][...]      # bf16
        acc = jnp.dot(h, w, preferred_element_type=jnp.float32)
        acc = acc + b_all[i:i + 1, :out_dims[i]]   # static slice, f32 bias add
        if i < num_layers - 1:
            acc = jnp.maximum(acc, 0.0)
            h = acc.astype(jnp.bfloat16)           # next MXU pass in bf16
        else:
            o_ref[...] = acc.astype(o_ref.dtype)


def mlp_forward(x, params):
    """Flatten then run the whole LinearBlock stack in one Pallas kernel."""
    B = x.shape[0]
    h = x.reshape(B, -1).astype(jnp.bfloat16)   # torch .view + bf16 MXU feed
    num_layers = len(params)
    out_dims = tuple(int(w.shape[1]) for w, _ in params)
    nf_out = out_dims[-1]

    # Pack all biases (f32, exact) into one lane-aligned array: 1 DMA not L.
    pad = max(128, ((max(out_dims) + 127) // 128) * 128)
    b_packed = jnp.zeros((num_layers, pad), jnp.float32)
    for i, (_, b) in enumerate(params):
        b_packed = b_packed.at[i, : b.shape[0]].set(b.astype(jnp.float32))

    ws = [w.astype(jnp.bfloat16) for w, _ in params]

    flops = 0
    bytes_accessed = h.size * h.dtype.itemsize
    for w in ws:
        flops += 2 * B * w.shape[0] * w.shape[1]
        bytes_accessed += w.size * w.dtype.itemsize
    bytes_accessed += b_packed.size * 4 + B * nf_out * 4

    kernel = functools.partial(_mlp_fused_kernel, out_dims=out_dims)
    vmem_spec = pl.BlockSpec(memory_space=pltpu.MemorySpace.VMEM)

    return pl.pallas_call(
        kernel,
        out_shape=jax.ShapeDtypeStruct((B, nf_out), jnp.float32),
        in_specs=[vmem_spec] * (1 + num_layers + 1),
        out_specs=vmem_spec,
        compiler_params=pltpu.CompilerParams(
            vmem_limit_bytes=16 * 1024 * 1024,   # explicit budget, big headroom
        ),
        cost_estimate=pl.CostEstimate(
            flops=flops, transcendentals=0, bytes_accessed=bytes_accessed
        ),
    )(h, *ws, b_packed)


def init_mlp_params(key, nf_in, nf_out, nf_mlp, num_blocks):
    """Deterministic init mirroring the module's layer shapes.

    Layer dims: nf_in -> nf_mlp -> ... (num_blocks-2 middle) ... -> nf_out
    Weights stored (in_features, out_features) so y = x @ W + b.
    """
    dims = [nf_in] + [nf_mlp] * (num_blocks - 1) + [nf_out]
    params = []
    for i in range(num_blocks):
        d_in, d_out = dims[i], dims[i + 1]
        key, kw, kb = jax.random.split(key, 3)
        bound = 1.0 / jnp.sqrt(d_in)
        w = jax.random.uniform(kw, (d_in, d_out), jnp.float32, -bound, bound)
        b = jax.random.uniform(kb, (d_out,), jnp.float32, -bound, bound)
        params.append((w, b))
    return params


if __name__ == "__main__":
    # Small shapes consistent with the module: NCHW (2, 4, 16, 16) -> nf_in=1024
    B, C, H, W = 2, 4, 16, 16
    nf_in = C * H * W
    nf_mlp = 32
    nf_out = 8
    num_blocks = 3  # nf_in->nf_mlp (relu), nf_mlp->nf_mlp (relu), nf_mlp->nf_out

    key = jax.random.PRNGKey(0)
    key, kx = jax.random.split(key)
    x = jax.random.normal(kx, (B, C, H, W), jnp.float32)

    params = init_mlp_params(key, nf_in, nf_out, nf_mlp, num_blocks)

    out = jax.block_until_ready(mlp_forward(x, params))

    # Pure-JAX f32 reference (module semantics). bf16 MXU feed in the kernel
    # gives ~1e-2-level deviations, so tolerance is relaxed vs. the old 1e-4.
    h = x.reshape(B, -1)
    for i, (w, b) in enumerate(params):
        h = h @ w + b
        if i < len(params) - 1:
            h = jnp.maximum(h, 0.0)
    ref = jax.block_until_ready(h)

    assert out.shape == (B, nf_out), out.shape
    assert jnp.allclose(out, ref, atol=5e-2, rtol=5e-2), "mismatch vs reference"

    print("KERNEL_OK")
</pallas_src>

<mosaic_0001>
module attributes {stable_mosaic.version = 11 : i64} {
  func.func @_mlp_fused_kernel(%arg0: memref<2x1024xbf16, #tpu.memory_space<vmem>>, %arg1: memref<1024x32xbf16, #tpu.memory_space<vmem>>, %arg2: memref<32x32xbf16, #tpu.memory_space<vmem>>, %arg3: memref<32x8xbf16, #tpu.memory_space<vmem>>, %arg4: memref<3x128xf32, #tpu.memory_space<vmem>>, %arg5: memref<2x8xf32, #tpu.memory_space<vmem>>) attributes {dimension_semantics = [], scalar_prefetch = 0 : i64, scratch_operands = 0 : i64, tpu.core_type = #tpu.core_type<tc>} {
    %c0 = arith.constant 0 : index
    %c0_0 = arith.constant 0 : index
    %0 = vector.load %arg4[%c0, %c0_0] : memref<3x128xf32, #tpu.memory_space<vmem>>, vector<3x128xf32>
    %c0_1 = arith.constant 0 : index
    %c0_2 = arith.constant 0 : index
    %1 = vector.load %arg0[%c0_1, %c0_2] : memref<2x1024xbf16, #tpu.memory_space<vmem>>, vector<2x1024xbf16>
    %c0_3 = arith.constant 0 : index
    %c0_4 = arith.constant 0 : index
    %2 = vector.load %arg1[%c0_3, %c0_4] : memref<1024x32xbf16, #tpu.memory_space<vmem>>, vector<1024x32xbf16>
    %cst = arith.constant dense<0.000000e+00> : vector<2x32xf32>
    %3 = tpu.matmul %1, %2, %cst {dimension_numbers = #tpu.dot_dimension_numbers<[1], [0], [0], [1], [0, 0, 1, 1], [], []>} : vector<2x1024xbf16>, vector<1024x32xbf16>, vector<2x32xf32> -> vector<2x32xf32>
    %4 = vector.extract_strided_slice %0 {offsets = [0, 0], sizes = [1, 32], strides = [1, 1]} : vector<3x128xf32> to vector<1x32xf32>
    %5 = vector.broadcast %4 : vector<1x32xf32> to vector<2x32xf32>
    %6 = arith.addf %3, %5 : vector<2x32xf32>
    %cst_5 = arith.constant 0.000000e+00 : f32
    %7 = vector.broadcast %cst_5 : f32 to vector<2x32xf32>
    %8 = arith.maximumf %6, %7 : vector<2x32xf32>
    %9 = arith.truncf %8 : vector<2x32xf32> to vector<2x32xbf16>
    %c0_6 = arith.constant 0 : index
    %c0_7 = arith.constant 0 : index
    %10 = vector.load %arg2[%c0_6, %c0_7] : memref<32x32xbf16, #tpu.memory_space<vmem>>, vector<32x32xbf16>
    %cst_8 = arith.constant dense<0.000000e+00> : vector<2x32xf32>
    %11 = tpu.matmul %9, %10, %cst_8 {dimension_numbers = #tpu.dot_dimension_numbers<[1], [0], [0], [1], [0, 0, 1, 1], [], []>} : vector<2x32xbf16>, vector<32x32xbf16>, vector<2x32xf32> -> vector<2x32xf32>
    %12 = vector.extract_strided_slice %0 {offsets = [1, 0], sizes = [1, 32], strides = [1, 1]} : vector<3x128xf32> to vector<1x32xf32>
    %13 = vector.broadcast %12 : vector<1x32xf32> to vector<2x32xf32>
    %14 = arith.addf %11, %13 : vector<2x32xf32>
    %cst_9 = arith.constant 0.000000e+00 : f32
    %15 = vector.broadcast %cst_9 : f32 to vector<2x32xf32>
    %16 = arith.maximumf %14, %15 : vector<2x32xf32>
    %17 = arith.truncf %16 : vector<2x32xf32> to vector<2x32xbf16>
    %c0_10 = arith.constant 0 : index
    %c0_11 = arith.constant 0 : index
    %18 = vector.load %arg3[%c0_10, %c0_11] : memref<32x8xbf16, #tpu.memory_space<vmem>>, vector<32x8xbf16>
    %cst_12 = arith.constant dense<0.000000e+00> : vector<2x8xf32>
    %19 = tpu.matmul %17, %18, %cst_12 {dimension_numbers = #tpu.dot_dimension_numbers<[1], [0], [0], [1], [0, 0, 1, 1], [], []>} : vector<2x32xbf16>, vector<32x8xbf16>, vector<2x8xf32> -> vector<2x8xf32>
    %20 = vector.extract_strided_slice %0 {offsets = [2, 0], sizes = [1, 8], strides = [1, 1]} : vector<3x128xf32> to vector<1x8xf32>
    %21 = vector.broadcast %20 : vector<1x8xf32> to vector<2x8xf32>
    %22 = arith.addf %19, %21 : vector<2x8xf32>
    %c0_13 = arith.constant 0 : index
    %c0_14 = arith.constant 0 : index
    %23 = vector.load %arg5[%c0_13, %c0_14] : memref<2x8xf32, #tpu.memory_space<vmem>>, vector<2x8xf32>
    tpu.vector_store %arg5[%c0_13, %c0_14], %22 {strides = array<i32>} : memref<2x8xf32, #tpu.memory_space<vmem>>, vector<2x8xf32>,
    return
  }
}

</mosaic_0001>

<bundles_post_ra>
// kernel: tpu_custom_call.1
= control target key start
LH: loop header
LB: loop body
LE: loop exit
PB: predicated region body
PF: predicated region fallthrough
CT: control target
= control target key end

     0   :  { %v152_v28 = vlaneseq  ;;  %v1182_v36 = vmov 1966171168   ;;  %s1457_s0 = inlined_call_operand.vmem [shape: bf16[2,1024], index: 0, kind: input, shape index: {}]   ;;  %s1458_s1 = inlined_call_operand.vmem [shape: bf16[1024,32], index: 1, kind: input, shape index: {}]   ;;  %s1459_s2 = inlined_call_operand.vmem [shape: bf16[32,32], index: 2, kind: input, shape index: {}]   ;;  %s1460_s3 = inlined_call_operand.vmem [shape: bf16[32,8], index: 3, kind: input, shape index: {}]   ;;  %s1461_s4 = inlined_call_operand.vmem [shape: f32[3,128], index: 4, kind: input, shape index: {}]   ;;  %s1462_s5 = inlined_call_operand.hbm [shape: f32[2,8], index: 5, kind: output, shape index: {}]  }
   0x1   :  { %v1089_v0 = vld [vmem:[%s1458_s1 + $0x40] sm:$0xff]   ;;  %v1093_v4 = vld [vmem:[%s1458_s1 + $0x48] sm:$0xff]   ;;  %v1097_v8 = vld [vmem:[%s1458_s1 + $0x50] sm:$0xff]   ;;  %v159_v37 = vunpack.c.l.s4 %v1182_v36 }
   0x2   :  { %v1090_v1 = vld [vmem:[%s1458_s1 + $0xc0] sm:$0xff]   ;;  %975 = vmatprep.subr.bf16.mxu0 %v1089_v0  ;;  %v1094_v5 = vld [vmem:[%s1458_s1 + $0xc8] sm:$0xff]   ;;  %v1098_v9 = vld [vmem:[%s1458_s1 + $0xd0] sm:$0xff]   ;;  %v1312_v33 = vshrl.u32 %v152_v28, 7 }
   0x3   :  { %v1091_v2 = vld [vmem:[%s1458_s1] sm:$0xff]   ;;  %997 = vmatprep.subr.bf16.mxu1 %v1090_v1  ;;  %v1095_v6 = vld [vmem:[%s1458_s1 + $0x8] sm:$0xff]   ;;  %v1099_v10 = vld [vmem:[%s1458_s1 + $0x10] sm:$0xff]   ;;  %v160_v40 = vunpack.c.0.s8 %v159_v37 }
   0x4   :  { %v1092_v3 = vld [vmem:[%s1458_s1 + $0x80] sm:$0xff]   ;;  %976 = vmatpush3.bf16.msra.mxu0 %v1091_v2  ;;  %v1096_v7 = vld [vmem:[%s1458_s1 + $0x88] sm:$0xff]   ;;  %v1100_v11 = vld [vmem:[%s1458_s1 + $0x90] sm:$0xff]  }
   0x5   :  { %998 = vmatpush3.bf16.msra.mxu1 %v1092_v3  ;;  %977 = vmatprep.subr.bf16.mxu0 %v1093_v4  ;;  %v1101_v12 = vld [vmem:[%s1458_s1 + $0x58] sm:$0xff]   ;;  %v1105_v16 = vld [vmem:[%s1458_s1 + $0x60] sm:$0xff]   ;;  %v1109_v20 = vld [vmem:[%s1458_s1 + $0x68] sm:$0xff]   ;;  %v1324_v41 = vsub.s32 %v160_v40, %v1312_v33 }
   0x6   :  { %999 = vmatprep.subr.bf16.mxu1 %v1094_v5  ;;  %v1102_v13 = vld [vmem:[%s1458_s1 + $0xd8] sm:$0xff]   ;;  %v1106_v17 = vld [vmem:[%s1458_s1 + $0xe0] sm:$0xff]   ;;  %v1110_v21 = vld [vmem:[%s1458_s1 + $0xe8] sm:$0xff]  }
   0x7   :  { %v1103_v14 = vld [vmem:[%s1458_s1 + $0x18] sm:$0xff]   ;;  %v1107_v18 = vld [vmem:[%s1458_s1 + $0x20] sm:$0xff]   ;;  %v1111_v22 = vld [vmem:[%s1458_s1 + $0x28] sm:$0xff]  }
   0x8   :  { %978 = vmatpush3.bf16.msra.mxu0 %v1095_v6  ;;  %v1104_v15 = vld [vmem:[%s1458_s1 + $0x98] sm:$0xff]   ;;  %v1108_v19 = vld [vmem:[%s1458_s1 + $0xa0] sm:$0xff]   ;;  %v1112_v23 = vld [vmem:[%s1458_s1 + $0xa8] sm:$0xff]  }
   0x9   :  { %1000 = vmatpush3.bf16.msra.mxu1 %v1096_v7  ;;  %979 = vmatprep.subr.bf16.mxu0 %v1097_v8  ;;  %v1113_v24 = vld [vmem:[%s1458_s1 + $0x70] sm:$0xff]   ;;  %v1117_v29 = vld [vmem:[%s1458_s1 + $0x78] sm:$0xff]   ;;  %v23_v34 = vld [vmem:[%s1457_s0] sm:$0xff] }
   0xa   :  { %1001 = vmatprep.subr.bf16.mxu1 %v1098_v9  ;;  %v1114_v25 = vld [vmem:[%s1458_s1 + $0xf0] sm:$0xff]   ;;  %v1118_v30 = vld [vmem:[%s1458_s1 + $0xf8] sm:$0xff]   ;;  %v1122_v35 = vld [vmem:[%s1458_s1 + $0x140] sm:$0xff]   ;;  %v157_v39 = vcombine.high %v23_v34, %v23_v34  ;;  %v164_v42 = vrot.slane %v23_v34, %v1324_v41 }
   0xb   :  { %v1115_v26 = vld [vmem:[%s1458_s1 + $0x30] sm:$0xff]   ;;  %v1119_v31 = vld [vmem:[%s1458_s1 + $0x38] sm:$0xff]   ;;  %v1123_v38 = vld [vmem:[%s1458_s1 + $0x1c0] sm:$0xff]  }
   0xc   :  { %980 = vmatpush3.bf16.msra.mxu0 %v1099_v10  ;;  %v1116_v27 = vld [vmem:[%s1458_s1 + $0xb0] sm:$0xff]   ;;  %v1120_v32 = vld [vmem:[%s1458_s1 + $0xb8] sm:$0xff]   ;;  %v1328_v43 = vrot.slane %v157_v39, %v1324_v41  ;;  %v172_v44 = vcombine.high %v164_v42, %v164_v42  ;;  %v180_v45 = vrot.slane %v164_v42, %v1324_v41  ;;  %v1124_v47 = vld [vmem:[%s1458_s1 + $0x100] sm:$0xff]  }
   0xd   :  { %1002 = vmatpush3.bf16.msra.mxu1 %v1100_v11  ;;  %981 = vmatprep.subr.bf16.mxu0 %v1101_v12  ;;  %v1125_v49 = vld [vmem:[%s1458_s1 + $0x180] sm:$0xff]   ;;  %v1126_v52 = vld [vmem:[%s1458_s1 + $0x148] sm:$0xff]   ;;  %v1130_v58 = vld [vmem:[%s1458_s1 + $0x150] sm:$0xff]  }
   0xe   :  { %1003 = vmatprep.subr.bf16.mxu1 %v1102_v13  ;;  %v173_v46 = vcombine.high %v1328_v43, %v1328_v43  ;;  %v194_v48 = vrot.slane %v172_v44, %v1324_v41  ;;  %v202_v51 = vcombine.high %v180_v45, %v180_v45  ;;  %v1127_v54 = vld [vmem:[%s1458_s1 + $0x1c8] sm:$0xff]   ;;  %v1131_v59 = vld [vmem:[%s1458_s1 + $0x1d0] sm:$0xff]   ;;  %v1134_v62 = vld [vmem:[%s1458_s1 + $0x158] sm:$0xff]  }
   0xf   :  { %v1128_v55 = vld [vmem:[%s1458_s1 + $0x108] sm:$0xff]   ;;  %v1132_v60 = vld [vmem:[%s1458_s1 + $0x110] sm:$0xff]   ;;  %v1135_v63 = vld [vmem:[%s1458_s1 + $0x1d8] sm:$0xff]  }
  0x10   :  { %982 = vmatpush3.bf16.msra.mxu0 %v1103_v14  ;;  %v201_v50 = vrot.slane %v173_v46, %v1324_v41  ;;  %630 = vmatprep.mubr.bf16.mxu0 %v194_v48  ;;  %v204_v53 = vcombine.high %v194_v48, %v194_v48  ;;  %v1129_v57 = vld [vmem:[%s1458_s1 + $0x188] sm:$0xff]   ;;  %v1133_v61 = vld [vmem:[%s1458_s1 + $0x190] sm:$0xff]   ;;  %v1136_v0 = vld [vmem:[%s1458_s1 + $0x118] sm:$0xff]  }
  0x11   :  { %1004 = vmatpush3.bf16.msra.mxu1 %v1104_v15  ;;  %983 = vmatprep.subr.bf16.mxu0 %v1105_v16  ;;  %v1137_v1 = vld [vmem:[%s1458_s1 + $0x198] sm:$0xff]   ;;  %v1138_v2 = vld [vmem:[%s1458_s1 + $0x160] sm:$0xff]   ;;  %v1142_v6 = vld [vmem:[%s1458_s1 + $0x168] sm:$0xff]  }
  0x12   :  { %1005 = vmatprep.subr.bf16.mxu1 %v1106_v17  ;;  %v205_v56 = vcombine.high %v201_v50, %v201_v50  ;;  %670 = vmatprep.mubr.bf16.mxu1 %v204_v53  ;;  %v1139_v3 = vld [vmem:[%s1458_s1 + $0x1e0] sm:$0xff]   ;;  %v1143_v7 = vld [vmem:[%s1458_s1 + $0x1e8] sm:$0xff]   ;;  %v1146_v10 = vld [vmem:[%s1458_s1 + $0x170] sm:$0xff]  }
  0x13   :  { %v1140_v4 = vld [vmem:[%s1458_s1 + $0x120] sm:$0xff]   ;;  %v1144_v8 = vld [vmem:[%s1458_s1 + $0x128] sm:$0xff]   ;;  %v1147_v11 = vld [vmem:[%s1458_s1 + $0x1f0] sm:$0xff]  }
  0x14   :  { %984 = vmatpush3.bf16.msra.mxu0 %v1107_v18  ;;  %v1141_v5 = vld [vmem:[%s1458_s1 + $0x1a0] sm:$0xff]   ;;  %v1145_v9 = vld [vmem:[%s1458_s1 + $0x1a8] sm:$0xff]   ;;  %v1148_v12 = vld [vmem:[%s1458_s1 + $0x130] sm:$0xff]  }
  0x15   :  { %1006 = vmatpush3.bf16.msra.mxu1 %v1108_v19  ;;  %985 = vmatprep.subr.bf16.mxu0 %v1109_v20 }
  0x16   :  { %1007 = vmatprep.subr.bf16.mxu1 %v1110_v21 }
  0x18   :  { %986 = vmatpush3.bf16.msra.mxu0 %v1111_v22 }
  0x19   :  { %1008 = vmatpush3.bf16.msra.mxu1 %v1112_v23  ;;  %987 = vmatprep.subr.bf16.mxu0 %v1113_v24 }
  0x1a   :  { %1009 = vmatprep.subr.bf16.mxu1 %v1114_v25 }
  0x1c   :  { %988 = vmatpush3.bf16.msra.mxu0 %v1115_v26 }
  0x1d   :  { %1010 = vmatpush3.bf16.msra.mxu1 %v1116_v27  ;;  %989 = vmatprep.subr.bf16.mxu0 %v1117_v29 }
  0x1e   :  { %1011 = vmatprep.subr.bf16.mxu1 %v1118_v30 }
  0x20   :  { %990 = vmatpush3.bf16.msra.mxu0 %v1119_v31 }
  0x21   :  { %1012 = vmatpush3.bf16.msra.mxu1 %v1120_v32  ;;  %1019 = vmatprep.subr.bf16.mxu0 %v1122_v35 }
  0x22   :  { %1041 = vmatprep.subr.bf16.mxu1 %v1123_v38 }
  0x23   :  { %631 = vmatmul.mubr.bf16.vlgmr.msra.gmra.mrb[0].mxu0 %v180_v45 }
  0x24   :  { %1020 = vmatpush3.bf16.msra.mxu0 %v1124_v47  ;;  %671 = vmatmul.mubr.bf16.vlgmr.msra.gmra.mrb[0].mxu1 %v202_v51 }
  0x25   :  { %1021 = vmatprep.subr.bf16.mxu0 %v1126_v52  ;;  %1042 = vmatpush3.bf16.msra.mxu1 %v1125_v49 }
  0x26   :  { %710 = vmatprep.mubr.bf16.mxu0 %v201_v50  ;;  %1043 = vmatprep.subr.bf16.mxu1 %v1127_v54 }
  0x27   :  { %750 = vmatprep.mubr.bf16.mxu1 %v205_v56 }
  0x28   :  { %1022 = vmatpush3.bf16.msra.mxu0 %v1128_v55 }
  0x29   :  { %1023 = vmatprep.subr.bf16.mxu0 %v1130_v58  ;;  %1044 = vmatpush3.bf16.msra.mxu1 %v1129_v57 }
  0x2a   :  { %1045 = vmatprep.subr.bf16.mxu1 %v1131_v59 }
  0x2c   :  { %1024 = vmatpush3.bf16.msra.mxu0 %v1132_v60 }
  0x2d   :  { %1025 = vmatprep.subr.bf16.mxu0 %v1134_v62  ;;  %1046 = vmatpush3.bf16.msra.mxu1 %v1133_v61 }
  0x2e   :  { %1047 = vmatprep.subr.bf16.mxu1 %v1135_v63 }
  0x30   :  { %1026 = vmatpush3.bf16.msra.mxu0 %v1136_v0 }
  0x31   :  { %1027 = vmatprep.subr.bf16.mxu0 %v1138_v2  ;;  %1048 = vmatpush3.bf16.msra.mxu1 %v1137_v1 }
  0x32   :  { %1049 = vmatprep.subr.bf16.mxu1 %v1139_v3 }
  0x34   :  { %1028 = vmatpush3.bf16.msra.mxu0 %v1140_v4 }
  0x35   :  { %1029 = vmatprep.subr.bf16.mxu0 %v1142_v6  ;;  %1050 = vmatpush3.bf16.msra.mxu1 %v1141_v5 }
  0x36   :  { %1051 = vmatprep.subr.bf16.mxu1 %v1143_v7 }
  0x38   :  { %1030 = vmatpush3.bf16.msra.mxu0 %v1144_v8 }
  0x39   :  { %10 = vsyncpa [#allocation3], 0  ;;  %1031 = vmatprep.subr.bf16.mxu0 %v1146_v10  ;;  %v1150_v13 = vld [vmem:[%s1458_s1 + $0x178] sm:$0xff]   ;;  %1052 = vmatpush3.bf16.msra.mxu1 %v1145_v9  ;;  %v1149_v14 = vld [vmem:[%s1458_s1 + $0x1b0] sm:$0xff]   ;;  %v187_v17 = vrot.slane %v1328_v43, %v1324_v41  ;;  %v1183_v21 = vmov 0.0   ;;  %vm1184_vm0 = vmmov 0  }
  0x3a   :  { %1053 = vmatprep.subr.bf16.mxu1 %v1147_v11  ;;  %v1151_v15 = vld [vmem:[%s1458_s1 + $0x1f8] sm:$0xff]   ;;  %v1154_v20 = vld [vmem:[%s1459_s2] sm:$0xff]   ;;  %v1155_v22 = vld [vmem:[%s1459_s2 + $0x8] sm:$0xff]   ;;  %v154_v24 = vsub.s32 0, %v1312_v33  ;;  %vm780_vm1 = vcmask 261120   ;;  %v766_v55 = vsub.s32 1, %v1312_v33 }
  0x3b   :  { %v1152_v16 = vld [vmem:[%s1458_s1 + $0x138] sm:$0xff]   ;;  %v203_v19 = vcombine.high %v187_v17, %v187_v17  ;;  %v1156_v23 = vld [vmem:[%s1460_s3] sm:$0xff]   ;;  %v1157_v54 = vld [vmem:[%s1460_s3 + $0x8] sm:$0xff]   ;;  %v832_v0 = vsub.s32 2, %v1312_v33  ;;  %s1185_s27 = smov [#allocation2]   ;;  %vm889_vm2 = vcmask 58368  }
  0x3c   :  { %1032 = vmatpush3.bf16.msra.mxu0 %v1148_v12  ;;  %v1153_v18 = vld [vmem:[%s1458_s1 + $0x1b8] sm:$0xff]   ;;  %v22_v25 = vld [vmem:[%s1461_s4] sm:$0x7]  ;;  %s897_s28 = sshll.u32 %s1185_s27, 4  ;;  %s898_s28 = int_to_ptr.vmem [resolvable:$true] %s897_s28 }
  0x3d   :  { %1033 = vmatprep.subr.bf16.mxu0 %v1150_v13  ;;  %1054 = vmatpush3.bf16.msra.mxu1 %v1149_v14  ;;  %v155_v27 = vrot.slane %v22_v25, %v154_v24  ;;  %v767_v56 = vrot.slane %v22_v25, %v766_v55  ;;  %v833_v1 = vrot.slane %v22_v25, %v832_v0  ;;  %s1158_s3 = scalar_lea.vmem %s898_s28, 32  ;;  %p1163_p1 = scmp.lt.s32.totalorder %s898_s28, %s898_s28 }
  0x3e   :  { %1055 = vmatprep.subr.bf16.mxu1 %v1151_v15  ;;  %p1159_p0 = scmp.ne.s32.totalorder %s898_s28, %s1158_s3  ;;  %p1164_p2 = scmp.lt.s32.totalorder %s1158_s3, %s1158_s3 }
  0x40   :  { %1034 = vmatpush3.bf16.msra.mxu0 %v1152_v16  ;;  %p1165_p3 = por %p1164_p2, %p1163_p1 }
  0x41   :  { %1056 = vmatpush3.bf16.msra.mxu1 %v1153_v18  ;;  %1069 = vmatprep.subr.bf16.mxu0 %v1183_v21 }
  0x42   :  { %1077 = vmatprep.subr.bf16.mxu1 %v1183_v21  ;;  %p1166_p4 = pnand %p1165_p3, %p1159_p0 }
  0x43   :  { %711 = vmatmul.mubr.bf16.vlgmr.msra.gmra.mrb[4].mxu0 %v187_v17 }
  0x44   :  { %751 = vmatmul.mubr.bf16.vlgmr.msra.gmra.mrb[4].mxu1 %v203_v19  ;;  %1070 = vmatpush3.bf16.msra.mxu0 %v1154_v20 }
  0x45   :  { %1071 = vmatprep.subr.bf16.mxu0 %v1183_v21  ;;  %1073 = vmatprep.mubr.msk.bf16.mxu0 %vm1184_vm0, %v1183_v21 }
  0x46   :  { %1081 = vmatprep.mubr.msk.bf16.mxu1 %vm1184_vm0, %v1183_v21  ;;  %1078 = vmatpush3.bf16.msra.mxu1 %v1156_v23 }
  0x47   :  { %1079 = vmatprep.subr.bf16.mxu1 %v1183_v21 }
  0x48   :  { %1072 = vmatpush3.bf16.msra.mxu0 %v1155_v22 }
  0x4a   :  { %1080 = vmatpush3.bf16.msra.mxu1 %v1157_v54 }
  0xf6   :  { %v991_v26 = vpop.f32.mrb[0].mxu0 }
  0xf7   :  { %v992_v28 = vpop.f32.mrb[1].mxu0  ;;  %v1013_v29 = vpop.f32.mrb[0].mxu1 }
  0xf8   :  { %v993_v30 = vadd.f32 %v992_v28, %v991_v26  ;;  %v994_v31 = vpop.f32.mrb[2].mxu0  ;;  %v1014_v32 = vpop.f32.mrb[1].mxu1 }
  0xf9   :  { %v995_v34 = vpop.f32.mrb[3].mxu0  ;;  %v1015_v36 = vadd.f32 %v1014_v32, %v1013_v29  ;;  %v1016_v37 = vpop.f32.mrb[2].mxu1 }
  0xfa   :  { %v633_v35 = vadd.f32 %v993_v30, %v155_v27  ;;  %v1017_v38 = vpop.f32.mrb[3].mxu1 }
  0xfc   :  { %v673_v39 = vadd.f32 %v1015_v36, %v633_v35 }
 0x116   :  { %v1035_v40 = vpop.f32.mrb[4].mxu0 }
 0x117   :  { %v1036_v41 = vpop.f32.mrb[5].mxu0  ;;  %v1057_v42 = vpop.f32.mrb[4].mxu1 }
 0x118   :  { %v1037_v43 = vadd.f32 %v1036_v41, %v1035_v40  ;;  %v1038_v44 = vpop.f32.mrb[6].mxu0  ;;  %v1058_v45 = vpop.f32.mrb[5].mxu1 }
 0x119   :  { %v1039_v46 = vpop.f32.mrb[7].mxu0  ;;  %v1059_v48 = vadd.f32 %v1058_v45, %v1057_v42  ;;  %v1060_v49 = vpop.f32.mrb[6].mxu1 }
 0x11a   :  { %v713_v47 = vadd.f32 %v1037_v43, %v673_v39  ;;  %v1061_v50 = vpop.f32.mrb[7].mxu1 }
 0x11c   :  { %v753_v51 = vadd.f32 %v1059_v48, %v713_v47 }
 0x11e   :  { %v758_v52 = vmax.f32 %v753_v51, 0.0 }
 0x120   :  { %v759_v53 = vpack.c.bf16 %v758_v52, %v758_v52 }
 0x122   :  { %1074 = vmatmul.mubr.msk.bf16.vlgmr.msra.gmra.mrb[8].mxu0 %vm780_vm1, %v759_v53 }
 0x1f5   :  { %v818_v57 = vpop.f32.mrb[8].mxu0 }
 0x1f6   :  { %v819_v58 = vadd.f32 %v818_v57, %v767_v56  ;;  %v1075_v59 = vpop.f32.mrb[9].mxu0 }
 0x1f7   :  { %v821_v60 = vpop.f32.mrb[10].mxu0 }
 0x1f8   :  { %v824_v61 = vmax.f32 %v819_v58, 0.0  ;;  %v1076_v62 = vpop.f32.mrb[11].mxu0 }
 0x1fa   :  { %v825_v63 = vpack.c.bf16 %v824_v61, %v824_v61 }
 0x1fc   :  { %1082 = vmatmul.mubr.msk.bf16.vlgmr.msra.gmra.mrb[8].mxu1 %vm780_vm1, %v825_v63 }
 0x2cf   :  { %v883_v2 = vpop.f32.mrb[8].mxu1 }
 0x2d0   :  { %v884_v3 = vadd.f32 %v883_v2, %v833_v1  ;;  %v1083_v4 = vpop.f32.mrb[9].mxu1 }
 0x2d1   :  { %v886_v5 = vpop.f32.mrb[10].mxu1 }
 0x2d2   :  { %v1084_v6 = vpop.f32.mrb[11].mxu1  ;;  %890 = vst.msk [vmem:[#allocation2] sm:$0x3] %vm889_vm2, %v884_v3 }
 0x2d3   :  { %1169 = shalt.err (!%p1166_p4)
}
 0x2d4   :  { %s1170_s6 = scalar_lea.hbm %s1462_s5, 32 }
 0x2d5   :  { %p1171_p5 = scmp.ne.s32.totalorder %s1462_s5, %s1170_s6  ;;  %p1174_p6 = scmp.lt.u32.totalorder %s1170_s6, %s1462_s5 }
 0x2d7   :  { %p1176_p7 = pnand %p1174_p6, %p1171_p5 }
 0x2d9   :  { %1179 = shalt.err (!%p1176_p7)
}
 0x2da   :  { %900 = dma.vmem_to_hbm [thread:$0]  %s898_s28, 32, %s1462_s5, [#allocation3]  }
 0x2db   :  { %1180 = dma.done.wait [#allocation3], 32  }
 0x2dc   :  { %1181 = vsyncadd [#allocation3], 4294967264 }
 0x2dd   :  { %904 = vsyncpa [#allocation3], 1 }

</bundles_post_ra>
